<compile_context>
chip_gen: v7x
topology: tpu7x:2x2x1
jax: 0.10.0
libtpu: 0.0.40
codegen_flags: <defaults>
</compile_context>

<pallas_src>
import jax
import jax.numpy as jnp
import numpy as np
from jax.experimental import pallas as pl
from jax.experimental.pallas import tpu as pltpu

NEURE_NUM = [23, 32, 32, 32, 32, 32, 16, 1]
N_LAYERS = len(NEURE_NUM) - 1           # 7 linear layers
N_HIDDEN = N_LAYERS - 1                 # 6 hidden (Linear+[BN]+ReLU) layers
BN_LAYERS = frozenset({0, 2, 3, 4})     # linear layers followed by BatchNorm1d
PAD = 128                               # lane-dense hidden-feature padding
IN_PAD = 32                             # input feature padding (23 -> 32)
BN_EPS = 1e-5


def _textnet_kernel(x_ref, w_ref, b_ref, wl_ref, out_ref):
    """x_ref:(tb,32) bf16 | w_ref:(6,128,128) bf16 | b_ref:(6,1,128) f32
    wl_ref:(1,128) bf16 | out_ref:(1,1,tb).

    Padding invariant: padded weight rows/cols and biases are zero and
    ReLU(0)=0, EXCEPT lane 127 of the last hidden layer, which pack_params pins
    to the constant 1 so that wl[0,127] carries the fc bias through the packed
    final dot.
    """
    f32 = jnp.float32
    bf16 = jnp.bfloat16

    # Layer 0: Linear(23,32)+BN(folded)+ReLU, K padded only to 32.
    h = jnp.dot(x_ref[...], w_ref[0, :IN_PAD, :],
                preferred_element_type=f32) + b_ref[0]
    h = jnp.maximum(h, 0.0)

    # Layers 1..5: Linear(+folded BN)+ReLU on lane-dense (tb,128) activations.
    for i in range(1, N_HIDDEN):
        h = jnp.dot(h.astype(bf16), w_ref[i],
                    preferred_element_type=f32) + b_ref[i]
        h = jnp.maximum(h, 0.0)

    # fc: Linear(16,1)+Sigmoid, produced lane-dense. Contract the feature axis
    # of h against the fc weight row (same contraction pattern as q @ k^T) so
    # the result is (1, tb) with the batch index in lanes -- no (tb,128) wide
    # store with a single valid column, no column->lane relayout.
    y = jax.lax.dot_general(
        wl_ref[...], h.astype(bf16),
        dimension_numbers=(((1,), (1,)), ((), ())),
        preferred_element_type=f32)                      # (1, tb)
    out_ref[0] = jax.nn.sigmoid(y).astype(out_ref.dtype)


def _round_up(x, m):
    return (x + m - 1) // m * m


def _choose_tile(b):
    """Batch-tile rows. Small batches: one tile (multiple of 16 sublanes for the
    bf16 input). Large batches: 1024-row tiles (multiple of 128 -> fully
    unmasked lane-dense packed output), shrinking to keep >= 2 grid steps so
    both v7x TensorCores get work."""
    if b <= 512:
        return _round_up(b, 16)
    tb = 1024
    while tb > 512 and _round_up(b, tb) // tb < 2:
        tb //= 2
    return tb


def _fold_bn(layer):
    """Fold eval-mode BatchNorm1d into the preceding Linear (host-side numpy)."""
    w = np.asarray(layer["w"], np.float32)      # (out, in), PyTorch convention
    b = np.asarray(layer["b"], np.float32)      # (out,)
    if "bn" in layer:
        bn = layer["bn"]
        s = np.asarray(bn["gamma"], np.float32) / np.sqrt(
            np.asarray(bn["var"], np.float32) + BN_EPS)
        w = w * s[:, None]
        b = (b - np.asarray(bn["mean"], np.float32)) * s + np.asarray(
            bn["beta"], np.float32)
    return w, b


def pack_params(layers):
    """Fold BN and pack weights into lane-dense stacks. Runs ONCE at init
    (hoisted out of the per-call forward path)."""
    assert len(layers) == N_LAYERS
    assert NEURE_NUM[-1] == 1 and NEURE_NUM[-2] < PAD - 1

    w_hid = np.zeros((N_HIDDEN, PAD, PAD), np.float32)
    b_hid = np.zeros((N_HIDDEN, 1, PAD), np.float32)
    for i in range(N_HIDDEN):
        w, b = _fold_bn(layers[i])
        out_d, in_d = w.shape
        w_hid[i, :in_d, :out_d] = w.T           # (in, out), zero-padded
        b_hid[i, 0, :out_d] = b

    # fc layer: weight stored as a (1,128) lane row. Its bias rides through the
    # packed final dot: pin padded output lane 127 of the last hidden layer to
    # the constant 1 (zero weight column + bias 1 + ReLU(1)=1) and put the fc
    # bias at wl[0,127].
    w_fc, b_fc = _fold_bn(layers[N_LAYERS - 1])          # (1,16), (1,)
    w_last = np.zeros((1, PAD), np.float32)
    w_last[0, :w_fc.shape[1]] = w_fc[0]
    b_hid[N_HIDDEN - 1, 0, PAD - 1] = 1.0
    w_last[0, PAD - 1] = float(b_fc[0])

    return (jnp.asarray(w_hid, jnp.bfloat16),
            jnp.asarray(b_hid, jnp.float32),
            jnp.asarray(w_last, jnp.bfloat16))


@jax.jit
def textnet_forward(x, packed):
    """TextNet forward pass. `packed` = pack_params(layers), computed once."""
    w_hid, b_hid, w_last = packed
    b, in_dim = x.shape
    assert in_dim == NEURE_NUM[0]

    tb = _choose_tile(b)
    b_pad = _round_up(b, tb)
    grid_n = b_pad // tb

    # 32-lane bf16 input slab (padded lanes/rows are zero -> inert downstream).
    x_pad = jnp.zeros((b_pad, IN_PAD), jnp.bfloat16)
    x_pad = x_pad.at[:b, :in_dim].set(x.astype(jnp.bfloat16))

    cost = pl.CostEstimate(
        flops=2 * b_pad * (IN_PAD * PAD + (N_HIDDEN - 1) * PAD * PAD + PAD),
        transcendentals=b_pad,
        bytes_accessed=(x_pad.size * 2 + w_hid.size * 2 + b_hid.size * 4
                        + w_last.size * 2 + b_pad * 4),
    )

    out = pl.pallas_call(
        _textnet_kernel,
        out_shape=jax.ShapeDtypeStruct((grid_n, 1, tb), x.dtype),
        grid=(grid_n,),
        in_specs=[
            pl.BlockSpec((tb, IN_PAD), lambda i: (i, 0)),              # x tile
            pl.BlockSpec((N_HIDDEN, PAD, PAD), lambda i: (0, 0, 0)),   # resident
            pl.BlockSpec((N_HIDDEN, 1, PAD), lambda i: (0, 0, 0)),     # resident
            pl.BlockSpec((1, PAD), lambda i: (0, 0)),                  # resident
        ],
        out_specs=pl.BlockSpec((1, 1, tb), lambda i: (i, 0, 0)),
        compiler_params=pltpu.CompilerParams(
            dimension_semantics=("parallel",)),
        cost_estimate=cost,
    )(x_pad, w_hid, b_hid, w_last)

    # (grid_n, 1, tb) lane-dense rows -> (b, 1); padded batch rows are dropped.
    return out.reshape(b_pad)[:b].reshape(b, 1)


def _reference(x, layers):
    """Pure-JAX f32 reference following the PyTorch module (eval-mode BN)."""
    h = x.astype(jnp.float32)
    for i, layer in enumerate(layers):
        h = h @ layer["w"].T + layer["b"]
        if "bn" in layer:
            bn = layer["bn"]
            h = ((h - bn["mean"]) / jnp.sqrt(bn["var"] + BN_EPS)
                 * bn["gamma"] + bn["beta"])
        if i < N_LAYERS - 1:
            h = jnp.maximum(h, 0.0)
    return jax.nn.sigmoid(h)


def init_params(key):
    """Linear weights ~ N(0, 0.1), biases zero (as in _initialize_weights).
    BN params/stats are random so the eval-mode folding path is exercised."""
    layers = []
    keys = jax.random.split(key, N_LAYERS)
    for i in range(N_LAYERS):
        in_d, out_d = NEURE_NUM[i], NEURE_NUM[i + 1]
        kw, kbn = jax.random.split(keys[i])
        layer = {
            "w": 0.1 * jax.random.normal(kw, (out_d, in_d), jnp.float32),
            "b": jnp.zeros((out_d,), jnp.float32),
        }
        if i in BN_LAYERS:
            k1, k2, k3, k4 = jax.random.split(kbn, 4)
            layer["bn"] = {
                "gamma": 1.0 + 0.1 * jax.random.normal(k1, (out_d,), jnp.float32),
                "beta": 0.1 * jax.random.normal(k2, (out_d,), jnp.float32),
                "mean": 0.1 * jax.random.normal(k3, (out_d,), jnp.float32),
                "var": (1.0 + 0.1 * jax.random.normal(k4, (out_d,), jnp.float32)) ** 2,
            }
        layers.append(layer)
    return layers


if __name__ == "__main__":
    key = jax.random.PRNGKey(0)
    k_p, k_x1, k_x2 = jax.random.split(key, 3)

    layers = init_params(k_p)
    packed = pack_params(layers)   # host-side, once; hoisted out of forward

    # batch=16  -> single small tile (fallback tiling path)
    # batch=600 -> tb=512, 2 grid steps, padded batch rows (production path)
    for batch, kx in ((16, k_x1), (600, k_x2)):
        x = jax.random.normal(kx, (batch, NEURE_NUM[0]), jnp.float32)
        y = jax.block_until_ready(textnet_forward(x, packed))
        y_ref = _reference(x, layers)
        assert y.shape == (batch, NEURE_NUM[-1]) and y.dtype == x.dtype
        err = float(jnp.max(jnp.abs(y - y_ref)))
        # bf16 matmul operands (f32 accumulate): tolerance deliberately relaxed
        # from the f32-only 5e-5 (expected error ~1e-3).
        assert err < 1e-2, f"mismatch vs reference (batch={batch}): {err}"

    print("KERNEL_OK")
</pallas_src>

<mosaic_0001>
module attributes {stable_mosaic.version = 11 : i64} {
  func.func @_textnet_kernel(%arg0: i32, %arg1: memref<16x32xbf16, #tpu.memory_space<vmem>>, %arg2: memref<6x128x128xbf16, #tpu.memory_space<vmem>>, %arg3: memref<6x1x128xf32, #tpu.memory_space<vmem>>, %arg4: memref<1x128xbf16, #tpu.memory_space<vmem>>, %arg5: memref<1x1x16xf32, #tpu.memory_space<vmem>>) attributes {dimension_semantics = [#tpu.dimension_semantics<parallel>], iteration_bounds = array<i64: 1>, scalar_prefetch = 0 : i64, scratch_operands = 0 : i64, tpu.core_type = #tpu.core_type<tc>, window_params = [{transform_indices = @transform_0, window_bounds = array<i64: 16, 32>}, {pipeline_mode = #tpu.pipeline_mode<synchronous>, transform_indices = @transform_1, window_bounds = array<i64: 6, 128, 128>}, {pipeline_mode = #tpu.pipeline_mode<synchronous>, transform_indices = @transform_2, window_bounds = array<i64: 6, 1, 128>}, {pipeline_mode = #tpu.pipeline_mode<synchronous>, transform_indices = @transform_3, window_bounds = array<i64: 1, 128>}, {transform_indices = @transform_4, window_bounds = array<i64: 1, 1, 16>}]} {
    %c0 = arith.constant 0 : index
    %c0_0 = arith.constant 0 : index
    %0 = vector.load %arg1[%c0, %c0_0] : memref<16x32xbf16, #tpu.memory_space<vmem>>, vector<16x32xbf16>
    %c0_1 = arith.constant 0 : index
    %c0_2 = arith.constant 0 : index
    %c0_3 = arith.constant 0 : index
    %1 = vector.load %arg2[%c0_1, %c0_2, %c0_3] : memref<6x128x128xbf16, #tpu.memory_space<vmem>>, vector<1x32x128xbf16>
    %2 = vector.shape_cast %1 : vector<1x32x128xbf16> to vector<32x128xbf16>
    %cst = arith.constant dense<0.000000e+00> : vector<16x128xf32>
    %3 = tpu.matmul %0, %2, %cst {dimension_numbers = #tpu.dot_dimension_numbers<[1], [0], [0], [1], [0, 0, 1, 1], [], []>} : vector<16x32xbf16>, vector<32x128xbf16>, vector<16x128xf32> -> vector<16x128xf32>
    %c0_4 = arith.constant 0 : index
    %c0_5 = arith.constant 0 : index
    %c0_6 = arith.constant 0 : index
    %4 = vector.load %arg3[%c0_4, %c0_5, %c0_6] : memref<6x1x128xf32, #tpu.memory_space<vmem>>, vector<1x1x128xf32>
    %5 = vector.shape_cast %4 : vector<1x1x128xf32> to vector<1x128xf32>
    %6 = vector.broadcast %5 : vector<1x128xf32> to vector<16x128xf32>
    %7 = arith.addf %3, %6 : vector<16x128xf32>
    %cst_7 = arith.constant 0.000000e+00 : f32
    %8 = vector.broadcast %cst_7 : f32 to vector<16x128xf32>
    %9 = arith.maximumf %7, %8 : vector<16x128xf32>
    %10 = arith.truncf %9 : vector<16x128xf32> to vector<16x128xbf16>
    %c1 = arith.constant 1 : index
    %c0_8 = arith.constant 0 : index
    %c0_9 = arith.constant 0 : index
    %11 = vector.load %arg2[%c1, %c0_8, %c0_9] : memref<6x128x128xbf16, #tpu.memory_space<vmem>>, vector<1x128x128xbf16>
    %12 = vector.shape_cast %11 : vector<1x128x128xbf16> to vector<128x128xbf16>
    %cst_10 = arith.constant dense<0.000000e+00> : vector<16x128xf32>
    %13 = tpu.matmul %10, %12, %cst_10 {dimension_numbers = #tpu.dot_dimension_numbers<[1], [0], [0], [1], [0, 0, 1, 1], [], []>} : vector<16x128xbf16>, vector<128x128xbf16>, vector<16x128xf32> -> vector<16x128xf32>
    %c1_11 = arith.constant 1 : index
    %c0_12 = arith.constant 0 : index
    %c0_13 = arith.constant 0 : index
    %14 = vector.load %arg3[%c1_11, %c0_12, %c0_13] : memref<6x1x128xf32, #tpu.memory_space<vmem>>, vector<1x1x128xf32>
    %15 = vector.shape_cast %14 : vector<1x1x128xf32> to vector<1x128xf32>
    %16 = vector.broadcast %15 : vector<1x128xf32> to vector<16x128xf32>
    %17 = arith.addf %13, %16 : vector<16x128xf32>
    %cst_14 = arith.constant 0.000000e+00 : f32
    %18 = vector.broadcast %cst_14 : f32 to vector<16x128xf32>
    %19 = arith.maximumf %17, %18 : vector<16x128xf32>
    %20 = arith.truncf %19 : vector<16x128xf32> to vector<16x128xbf16>
    %c2 = arith.constant 2 : index
    %c0_15 = arith.constant 0 : index
    %c0_16 = arith.constant 0 : index
    %21 = vector.load %arg2[%c2, %c0_15, %c0_16] : memref<6x128x128xbf16, #tpu.memory_space<vmem>>, vector<1x128x128xbf16>
    %22 = vector.shape_cast %21 : vector<1x128x128xbf16> to vector<128x128xbf16>
    %cst_17 = arith.constant dense<0.000000e+00> : vector<16x128xf32>
    %23 = tpu.matmul %20, %22, %cst_17 {dimension_numbers = #tpu.dot_dimension_numbers<[1], [0], [0], [1], [0, 0, 1, 1], [], []>} : vector<16x128xbf16>, vector<128x128xbf16>, vector<16x128xf32> -> vector<16x128xf32>
    %c2_18 = arith.constant 2 : index
    %c0_19 = arith.constant 0 : index
    %c0_20 = arith.constant 0 : index
    %24 = vector.load %arg3[%c2_18, %c0_19, %c0_20] : memref<6x1x128xf32, #tpu.memory_space<vmem>>, vector<1x1x128xf32>
    %25 = vector.shape_cast %24 : vector<1x1x128xf32> to vector<1x128xf32>
    %26 = vector.broadcast %25 : vector<1x128xf32> to vector<16x128xf32>
    %27 = arith.addf %23, %26 : vector<16x128xf32>
    %cst_21 = arith.constant 0.000000e+00 : f32
    %28 = vector.broadcast %cst_21 : f32 to vector<16x128xf32>
    %29 = arith.maximumf %27, %28 : vector<16x128xf32>
    %30 = arith.truncf %29 : vector<16x128xf32> to vector<16x128xbf16>
    %c3 = arith.constant 3 : index
    %c0_22 = arith.constant 0 : index
    %c0_23 = arith.constant 0 : index
    %31 = vector.load %arg2[%c3, %c0_22, %c0_23] : memref<6x128x128xbf16, #tpu.memory_space<vmem>>, vector<1x128x128xbf16>
    %32 = vector.shape_cast %31 : vector<1x128x128xbf16> to vector<128x128xbf16>
    %cst_24 = arith.constant dense<0.000000e+00> : vector<16x128xf32>
    %33 = tpu.matmul %30, %32, %cst_24 {dimension_numbers = #tpu.dot_dimension_numbers<[1], [0], [0], [1], [0, 0, 1, 1], [], []>} : vector<16x128xbf16>, vector<128x128xbf16>, vector<16x128xf32> -> vector<16x128xf32>
    %c3_25 = arith.constant 3 : index
    %c0_26 = arith.constant 0 : index
    %c0_27 = arith.constant 0 : index
    %34 = vector.load %arg3[%c3_25, %c0_26, %c0_27] : memref<6x1x128xf32, #tpu.memory_space<vmem>>, vector<1x1x128xf32>
    %35 = vector.shape_cast %34 : vector<1x1x128xf32> to vector<1x128xf32>
    %36 = vector.broadcast %35 : vector<1x128xf32> to vector<16x128xf32>
    %37 = arith.addf %33, %36 : vector<16x128xf32>
    %cst_28 = arith.constant 0.000000e+00 : f32
    %38 = vector.broadcast %cst_28 : f32 to vector<16x128xf32>
    %39 = arith.maximumf %37, %38 : vector<16x128xf32>
    %40 = arith.truncf %39 : vector<16x128xf32> to vector<16x128xbf16>
    %c4 = arith.constant 4 : index
    %c0_29 = arith.constant 0 : index
    %c0_30 = arith.constant 0 : index
    %41 = vector.load %arg2[%c4, %c0_29, %c0_30] : memref<6x128x128xbf16, #tpu.memory_space<vmem>>, vector<1x128x128xbf16>
    %42 = vector.shape_cast %41 : vector<1x128x128xbf16> to vector<128x128xbf16>
    %cst_31 = arith.constant dense<0.000000e+00> : vector<16x128xf32>
    %43 = tpu.matmul %40, %42, %cst_31 {dimension_numbers = #tpu.dot_dimension_numbers<[1], [0], [0], [1], [0, 0, 1, 1], [], []>} : vector<16x128xbf16>, vector<128x128xbf16>, vector<16x128xf32> -> vector<16x128xf32>
    %c4_32 = arith.constant 4 : index
    %c0_33 = arith.constant 0 : index
    %c0_34 = arith.constant 0 : index
    %44 = vector.load %arg3[%c4_32, %c0_33, %c0_34] : memref<6x1x128xf32, #tpu.memory_space<vmem>>, vector<1x1x128xf32>
    %45 = vector.shape_cast %44 : vector<1x1x128xf32> to vector<1x128xf32>
    %46 = vector.broadcast %45 : vector<1x128xf32> to vector<16x128xf32>
    %47 = arith.addf %43, %46 : vector<16x128xf32>
    %cst_35 = arith.constant 0.000000e+00 : f32
    %48 = vector.broadcast %cst_35 : f32 to vector<16x128xf32>
    %49 = arith.maximumf %47, %48 : vector<16x128xf32>
    %50 = arith.truncf %49 : vector<16x128xf32> to vector<16x128xbf16>
    %c5 = arith.constant 5 : index
    %c0_36 = arith.constant 0 : index
    %c0_37 = arith.constant 0 : index
    %51 = vector.load %arg2[%c5, %c0_36, %c0_37] : memref<6x128x128xbf16, #tpu.memory_space<vmem>>, vector<1x128x128xbf16>
    %52 = vector.shape_cast %51 : vector<1x128x128xbf16> to vector<128x128xbf16>
    %cst_38 = arith.constant dense<0.000000e+00> : vector<16x128xf32>
    %53 = tpu.matmul %50, %52, %cst_38 {dimension_numbers = #tpu.dot_dimension_numbers<[1], [0], [0], [1], [0, 0, 1, 1], [], []>} : vector<16x128xbf16>, vector<128x128xbf16>, vector<16x128xf32> -> vector<16x128xf32>
    %c5_39 = arith.constant 5 : index
    %c0_40 = arith.constant 0 : index
    %c0_41 = arith.constant 0 : index
    %54 = vector.load %arg3[%c5_39, %c0_40, %c0_41] : memref<6x1x128xf32, #tpu.memory_space<vmem>>, vector<1x1x128xf32>
    %55 = vector.shape_cast %54 : vector<1x1x128xf32> to vector<1x128xf32>
    %56 = vector.broadcast %55 : vector<1x128xf32> to vector<16x128xf32>
    %57 = arith.addf %53, %56 : vector<16x128xf32>
    %cst_42 = arith.constant 0.000000e+00 : f32
    %58 = vector.broadcast %cst_42 : f32 to vector<16x128xf32>
    %59 = arith.maximumf %57, %58 : vector<16x128xf32>
    %c0_43 = arith.constant 0 : index
    %c0_44 = arith.constant 0 : index
    %60 = vector.load %arg4[%c0_43, %c0_44] : memref<1x128xbf16, #tpu.memory_space<vmem>>, vector<1x128xbf16>
    %61 = arith.truncf %59 : vector<16x128xf32> to vector<16x128xbf16>
    %cst_45 = arith.constant dense<0.000000e+00> : vector<1x16xf32>
    %62 = tpu.matmul %60, %61, %cst_45 {dimension_numbers = #tpu.dot_dimension_numbers<[1], [1], [0], [0], [0, 0, 1, 0], [], []>} : vector<1x128xbf16>, vector<16x128xbf16>, vector<1x16xf32> -> vector<1x16xf32>
    %63 = arith.negf %62 : vector<1x16xf32>
    %64 = math.exp %63 : vector<1x16xf32>
    %cst_46 = arith.constant 1.000000e+00 : f32
    %65 = vector.broadcast %cst_46 : f32 to vector<1x16xf32>
    %66 = arith.addf %65, %64 : vector<1x16xf32>
    %67 = arith.divf %65, %66 : vector<1x16xf32>
    %c0_47 = arith.constant 0 : index
    %c0_48 = arith.constant 0 : index
    %c0_49 = arith.constant 0 : index
    %68 = vector.load %arg5[%c0_47, %c0_48, %c0_49] : memref<1x1x16xf32, #tpu.memory_space<vmem>>, vector<1x1x16xf32>
    %69 = vector.shape_cast %68 : vector<1x1x16xf32> to vector<1x16xf32>
    %70 = vector.shape_cast %67 : vector<1x16xf32> to vector<1x1x16xf32>
    tpu.vector_store %arg5[%c0_47, %c0_48, %c0_49], %70 {strides = array<i32>} : memref<1x1x16xf32, #tpu.memory_space<vmem>>, vector<1x1x16xf32>,
    return
  }
  func.func @transform_0(%arg0: i32) -> (i32, i32) {
    %c0_i32 = arith.constant 0 : i32
    %c0_i32_0 = arith.constant 0 : i32
    return %arg0, %c0_i32 : i32, i32
  }
  func.func @transform_1(%arg0: i32) -> (i32, i32, i32) {
    %c0_i32 = arith.constant 0 : i32
    %c0_i32_0 = arith.constant 0 : i32
    %c0_i32_1 = arith.constant 0 : i32
    %c0_i32_2 = arith.constant 0 : i32
    return %c0_i32, %c0_i32_0, %c0_i32_1 : i32, i32, i32
  }
  func.func @transform_2(%arg0: i32) -> (i32, i32, i32) {
    %c0_i32 = arith.constant 0 : i32
    %c0_i32_0 = arith.constant 0 : i32
    %c0_i32_1 = arith.constant 0 : i32
    %c0_i32_2 = arith.constant 0 : i32
    return %c0_i32, %c0_i32_0, %c0_i32_1 : i32, i32, i32
  }
  func.func @transform_3(%arg0: i32) -> (i32, i32) {
    %c0_i32 = arith.constant 0 : i32
    %c0_i32_0 = arith.constant 0 : i32
    %c0_i32_1 = arith.constant 0 : i32
    return %c0_i32, %c0_i32_0 : i32, i32
  }
  func.func @transform_4(%arg0: i32) -> (i32, i32, i32) {
    %c0_i32 = arith.constant 0 : i32
    %c0_i32_0 = arith.constant 0 : i32
    %c0_i32_1 = arith.constant 0 : i32
    return %arg0, %c0_i32, %c0_i32_0 : i32, i32, i32
  }
}

</mosaic_0001>

<bundles_post_ra>
// kernel: textnet_forward.1
= control target key start
LH: loop header
LB: loop body
LE: loop exit
PB: predicated region body
PF: predicated region fallthrough
CT: control target
= control target key end

     0   :  { %9 = vsyncpa [#allocation3], 0  ;;  %s1217_s0 = inlined_call_operand.vmem [shape: bf16[16,32], index: 0, kind: input, shape index: {}]   ;;  %s1218_s1 = inlined_call_operand.hbm [shape: bf16[6,128,128], index: 1, kind: input, shape index: {}]   ;;  %s1219_s2 = inlined_call_operand.vmem [shape: f32[6,1,128], index: 2, kind: input, shape index: {}]   ;;  %s1220_s3 = inlined_call_operand.vmem [shape: bf16[1,128], index: 3, kind: input, shape index: {}]   ;;  %s1221_s4 = inlined_call_operand.hbm [shape: f32[1,1,16], index: 4, kind: output, shape index: {}]  }
   0x1   :  { %10 = vsyncpa [#allocation4], 0  ;;  %s1081_s15 = smov [#allocation2]   ;;  %s1033_s19 = scalar_lea.hbm %s1218_s1, 6144 }
   0x2   :  { %s18_s16 = sshll.u32 %s1081_s15, 4  ;;  %p1034_p0 = scmp.ne.s32.totalorder %s1218_s1, %s1033_s19  ;;  %s19_s16 = int_to_ptr.vmem [resolvable:$true] %s18_s16 }
   0x3   :  { %p1037_p1 = scmp.lt.u32.totalorder %s1033_s19, %s1218_s1 }
   0x5   :  { %p1039_p2 = pnand %p1037_p1, %p1034_p0 }
   0x7   :  { %1042 = shalt.err (!%p1039_p2)
}
   0x8   :  { %s1043_s24 = scalar_lea.vmem %s19_s16, 6144  ;;  %p1048_p4 = scmp.lt.s32.totalorder %s19_s16, %s19_s16 }
   0x9   :  { %p1044_p3 = scmp.ne.s32.totalorder %s19_s16, %s1043_s24  ;;  %p1049_p5 = scmp.lt.s32.totalorder %s1043_s24, %s1043_s24 }
   0xb   :  { %p1050_p6 = por %p1049_p5, %p1048_p4 }
   0xd   :  { %p1051_p7 = pnand %p1050_p6, %p1044_p3 }
   0xf   :  { %1054 = shalt.err (!%p1051_p7)
}
  0x10   :  { %s1082_s25 = smov 64   ;;  %s1083_s26 = smov 4  }
  0x11   :  { %24 = dma.hbm_to_vmem [thread:$0]  %s1218_s1, 6144, %s19_s16, [#allocation3], %s1082_s25, %s1082_s25, %s1083_s26  }
  0x12   :  { %1077 = dma.done.wait [#allocation3], 6144  }
  0x13   :  { %1078 = vsyncadd [#allocation3], 4294961152  ;;  %v1084_v0 = vmov 0.0   ;;  %vm1085_vm0 = vmmov 0   ;;  %v986_v1 = vld [vmem:[#allocation2] sm:$0xff]   ;;  %v987_v2 = vld [vmem:[#allocation2 + $0x8] sm:$0xff]  }
  0x14   :  { %866 = vmatprep.subr.bf16.mxu0 %v1084_v0  ;;  %870 = vmatprep.mubr.msk.bf16.mxu0 %vm1085_vm0, %v1084_v0  ;;  %v989_v3 = vld [vmem:[#allocation2 + $0x40] sm:$0xff]   ;;  %v990_v5 = vld [vmem:[#allocation2 + $0x48] sm:$0xff]   ;;  %vm63_vm1 = vcmask 261120   ;;  %v991_v6 = vld [vmem:[#allocation2 + $0x50] sm:$0xff]   ;;  %vm743_vm2 = vcmask 122880  }
  0x15   :  { %874 = vmatprep.subr.bf16.mxu1 %v1084_v0  ;;  %890 = vmatprep.mubr.msk.bf16.mxu1 %vm1085_vm0, %v1084_v0  ;;  %v988_v4 = vld [vmem:[%s1217_s0] sm:$0xff]   ;;  %v992_v7 = vld [vmem:[#allocation2 + $0x58] sm:$0xff]   ;;  %v994_v9 = vld [vmem:[#allocation2 + $0x68] sm:$0xff]  }
  0x16   :  { %867 = vmatpush3.bf16.msra.mxu0 %v986_v1  ;;  %875 = vmatpush3.bf16.msra.mxu1 %v989_v3  ;;  %v993_v8 = vld [vmem:[#allocation2 + $0x60] sm:$0xff]   ;;  %v995_v10 = vld [vmem:[#allocation2 + $0x70] sm:$0xff]   ;;  %v996_v11 = vld [vmem:[#allocation2 + $0x78] sm:$0xff]  }
  0x17   :  { %868 = vmatprep.subr.bf16.mxu0 %v1084_v0  ;;  %876 = vmatprep.subr.bf16.mxu1 %v1084_v0  ;;  %v997_v12 = vld [vmem:[#allocation2 + $0x80] sm:$0xff]   ;;  %v998_v13 = vld [vmem:[#allocation2 + $0x88] sm:$0xff]   ;;  %v999_v14 = vld [vmem:[#allocation2 + $0x90] sm:$0xff]  }
  0x18   :  { %v1000_v15 = vld [vmem:[#allocation2 + $0x98] sm:$0xff]   ;;  %v1001_v16 = vld [vmem:[#allocation2 + $0xa0] sm:$0xff]   ;;  %v1002_v17 = vld [vmem:[#allocation2 + $0xa8] sm:$0xff]  }
  0x19   :  { %v760_v18 = vld [vmem:[%s1219_s2] ss:$0 sm:$0xff]  ;;  %v1003_v28 = vld [vmem:[#allocation2 + $0xb0] sm:$0xff]   ;;  %v1004_v29 = vld [vmem:[#allocation2 + $0xb8] sm:$0xff]  }
  0x1a   :  { %869 = vmatpush3.bf16.msra.mxu0 %v987_v2  ;;  %877 = vmatpush3.bf16.msra.mxu1 %v990_v5  ;;  %v1005_v30 = vld [vmem:[#allocation2 + $0xc0] sm:$0xff]   ;;  %v1006_v31 = vld [vmem:[#allocation2 + $0xc8] sm:$0xff]   ;;  %v1007_v32 = vld [vmem:[#allocation2 + $0xd0] sm:$0xff]  }
  0x1b   :  { %894 = vmatprep.subr.bf16.mxu0 %v1084_v0  ;;  %878 = vmatprep.subr.bf16.mxu1 %v1084_v0  ;;  %v1008_v33 = vld [vmem:[#allocation2 + $0xd8] sm:$0xff]   ;;  %v1009_v34 = vld [vmem:[#allocation2 + $0xe0] sm:$0xff]   ;;  %v1010_v35 = vld [vmem:[#allocation2 + $0xe8] sm:$0xff]  }
  0x1c   :  { %v766_v36 = vld [vmem:[%s1219_s2 + $0x1] ss:$0 sm:$0xff]  ;;  %v1011_v46 = vld [vmem:[#allocation2 + $0xf0] sm:$0xff]   ;;  %v1012_v47 = vld [vmem:[#allocation2 + $0xf8] sm:$0xff]  }
  0x1d   :  { %871 = vmatmul.mubr.msk.bf16.vlgmr.msra.gmra.mrb[0].mxu0 %vm63_vm1, %v988_v4  ;;  %v1013_v48 = vld [vmem:[#allocation2 + $0x100] sm:$0xff]   ;;  %v1014_v49 = vld [vmem:[#allocation2 + $0x108] sm:$0xff]   ;;  %v1015_v50 = vld [vmem:[#allocation2 + $0x110] sm:$0xff]  }
  0x1e   :  { %910 = vmatprep.mubr.msk.bf16.mxu0 %vm1085_vm0, %v1084_v0  ;;  %879 = vmatpush3.bf16.msra.mxu1 %v991_v6  ;;  %v1016_v51 = vld [vmem:[#allocation2 + $0x118] sm:$0xff]   ;;  %v1017_v52 = vld [vmem:[#allocation2 + $0x120] sm:$0xff]   ;;  %v1018_v53 = vld [vmem:[#allocation2 + $0x128] sm:$0xff]  }
  0x1f   :  { %880 = vmatprep.subr.bf16.mxu1 %v1084_v0  ;;  %895 = vmatpush3.bf16.msra.mxu0 %v997_v12  ;;  %v776_v54 = vld [vmem:[%s1219_s2 + $0x2] ss:$0 sm:$0xff]  ;;  %v1019_v1 = vld [vmem:[#allocation2 + $0x130] sm:$0xff]   ;;  %v1020_v2 = vld [vmem:[#allocation2 + $0x138] sm:$0xff]  }
  0x20   :  { %896 = vmatprep.subr.bf16.mxu0 %v1084_v0  ;;  %v1021_v3 = vld [vmem:[#allocation2 + $0x140] sm:$0xff]   ;;  %v1022_v4 = vld [vmem:[#allocation2 + $0x148] sm:$0xff]   ;;  %v1023_v5 = vld [vmem:[#allocation2 + $0x150] sm:$0xff]  }
  0x21   :  { %v1024_v6 = vld [vmem:[#allocation2 + $0x158] sm:$0xff]  }
  0x22   :  { %881 = vmatpush3.bf16.msra.mxu1 %v992_v7  ;;  %v1025_v7 = vld [vmem:[#allocation2 + $0x160] sm:$0xff]  }
  0x23   :  { %882 = vmatprep.subr.bf16.mxu1 %v1084_v0  ;;  %897 = vmatpush3.bf16.msra.mxu0 %v998_v13 }
  0x24   :  { %898 = vmatprep.subr.bf16.mxu0 %v1084_v0 }
  0x26   :  { %883 = vmatpush3.bf16.msra.mxu1 %v993_v8  ;;  %v1026_v8 = vld [vmem:[#allocation2 + $0x168] sm:$0xff]  }
  0x27   :  { %884 = vmatprep.subr.bf16.mxu1 %v1084_v0  ;;  %899 = vmatpush3.bf16.msra.mxu0 %v999_v14 }
  0x28   :  { %900 = vmatprep.subr.bf16.mxu0 %v1084_v0 }
  0x2a   :  { %885 = vmatpush3.bf16.msra.mxu1 %v994_v9  ;;  %v786_v9 = vld [vmem:[%s1219_s2 + $0x3] ss:$0 sm:$0xff] }
  0x2b   :  { %886 = vmatprep.subr.bf16.mxu1 %v1084_v0  ;;  %901 = vmatpush3.bf16.msra.mxu0 %v1000_v15 }
  0x2c   :  { %902 = vmatprep.subr.bf16.mxu0 %v1084_v0 }
  0x2e   :  { %887 = vmatpush3.bf16.msra.mxu1 %v995_v10 }
  0x2f   :  { %888 = vmatprep.subr.bf16.mxu1 %v1084_v0  ;;  %903 = vmatpush3.bf16.msra.mxu0 %v1001_v16 }
  0x30   :  { %904 = vmatprep.subr.bf16.mxu0 %v1084_v0 }
  0x32   :  { %889 = vmatpush3.bf16.msra.mxu1 %v996_v11 }
  0x33   :  { %914 = vmatprep.subr.bf16.mxu1 %v1084_v0  ;;  %905 = vmatpush3.bf16.msra.mxu0 %v1002_v17 }
  0x34   :  { %906 = vmatprep.subr.bf16.mxu0 %v1084_v0 }
  0x37   :  { %907 = vmatpush3.bf16.msra.mxu0 %v1003_v28 }
  0x38   :  { %908 = vmatprep.subr.bf16.mxu0 %v1084_v0 }
  0x3b   :  { %909 = vmatpush3.bf16.msra.mxu0 %v1004_v29 }
  0x3c   :  { %934 = vmatprep.subr.bf16.mxu0 %v1084_v0 }
  0xf0   :  { %v101_v19 = vpop.f32.mrb[0].mxu0 }
  0xf1   :  { %v102_v20 = vadd.f32 %v760_v18, %v101_v19  ;;  %v872_v21 = vpop.f32.mrb[1].mxu0  ;;  %v1027_v19 = vld [vmem:[#allocation2 + $0x170] sm:$0xff]  }
  0xf2   :  { %v104_v22 = vpop.f32.mrb[2].mxu0  ;;  %v796_v21 = vld [vmem:[%s1219_s2 + $0x4] ss:$0 sm:$0xff] }
  0xf3   :  { %v105_v23 = vadd.f32 %v760_v18, %v104_v22  ;;  %v873_v24 = vpop.f32.mrb[3].mxu0  ;;  %v108_v25 = vmax.f32 %v102_v20, 0.0  ;;  %v1028_v20 = vld [vmem:[#allocation2 + $0x178] sm:$0xff]  }
  0xf5   :  { %v109_v26 = vmax.f32 %v105_v23, 0.0 }
  0xf7   :  { %v110_v27 = vpack.c.bf16 %v109_v26, %v108_v25 }
  0xf9   :  { %891 = vmatmul.mubr.bf16.vlgmr.msra.gmra.mrb[0].mxu1 %v110_v27 }
  0xfa   :  { %930 = vmatprep.mubr.msk.bf16.mxu1 %vm1085_vm0, %v1084_v0  ;;  %915 = vmatpush3.bf16.msra.mxu1 %v1005_v30 }
  0xfb   :  { %916 = vmatprep.subr.bf16.mxu1 %v1084_v0 }
  0xfe   :  { %917 = vmatpush3.bf16.msra.mxu1 %v1006_v31 }
  0xff   :  { %918 = vmatprep.subr.bf16.mxu1 %v1084_v0 }
 0x102   :  { %919 = vmatpush3.bf16.msra.mxu1 %v1007_v32 }
 0x103   :  { %920 = vmatprep.subr.bf16.mxu1 %v1084_v0 }
 0x106   :  { %921 = vmatpush3.bf16.msra.mxu1 %v1008_v33 }
 0x107   :  { %922 = vmatprep.subr.bf16.mxu1 %v1084_v0 }
 0x10a   :  { %923 = vmatpush3.bf16.msra.mxu1 %v1009_v34 }
 0x10b   :  { %924 = vmatprep.subr.bf16.mxu1 %v1084_v0 }
 0x10e   :  { %925 = vmatpush3.bf16.msra.mxu1 %v1010_v35 }
 0x10f   :  { %926 = vmatprep.subr.bf16.mxu1 %v1084_v0 }
 0x112   :  { %927 = vmatpush3.bf16.msra.mxu1 %v1011_v46 }
 0x113   :  { %928 = vmatprep.subr.bf16.mxu1 %v1084_v0 }
 0x116   :  { %929 = vmatpush3.bf16.msra.mxu1 %v1012_v47 }
 0x117   :  { %954 = vmatprep.subr.bf16.mxu1 %v1084_v0 }
 0x1cc   :  { %v218_v37 = vpop.f32.mrb[0].mxu1 }
 0x1cd   :  { %v219_v38 = vadd.f32 %v766_v36, %v218_v37  ;;  %v892_v39 = vpop.f32.mrb[1].mxu1 }
 0x1ce   :  { %v221_v40 = vpop.f32.mrb[2].mxu1 }
 0x1cf   :  { %v222_v41 = vadd.f32 %v766_v36, %v221_v40  ;;  %v893_v42 = vpop.f32.mrb[3].mxu1  ;;  %v225_v43 = vmax.f32 %v219_v38, 0.0  ;;  %v695_v40 = vld [vmem:[%s1220_s3] sm:$0x1] }
 0x1d1   :  { %v226_v44 = vmax.f32 %v222_v41, 0.0 }
 0x1d3   :  { %v227_v45 = vpack.c.bf16 %v226_v44, %v225_v43 }
 0x1d5   :  { %911 = vmatmul.mubr.bf16.vlgmr.msra.gmra.mrb[4].mxu0 %v227_v45 }
 0x1d6   :  { %950 = vmatprep.mubr.msk.bf16.mxu0 %vm1085_vm0, %v1084_v0  ;;  %935 = vmatpush3.bf16.msra.mxu0 %v1013_v48 }
 0x1d7   :  { %936 = vmatprep.subr.bf16.mxu0 %v1084_v0 }
 0x1da   :  { %937 = vmatpush3.bf16.msra.mxu0 %v1014_v49 }
 0x1db   :  { %938 = vmatprep.subr.bf16.mxu0 %v1084_v0 }
 0x1de   :  { %939 = vmatpush3.bf16.msra.mxu0 %v1015_v50 }
 0x1df   :  { %940 = vmatprep.subr.bf16.mxu0 %v1084_v0 }
 0x1e2   :  { %941 = vmatpush3.bf16.msra.mxu0 %v1016_v51 }
 0x1e3   :  { %942 = vmatprep.subr.bf16.mxu0 %v1084_v0 }
 0x1e6   :  { %943 = vmatpush3.bf16.msra.mxu0 %v1017_v52 }
 0x1e7   :  { %944 = vmatprep.subr.bf16.mxu0 %v1084_v0 }
 0x1ea   :  { %945 = vmatpush3.bf16.msra.mxu0 %v1018_v53 }
 0x1eb   :  { %946 = vmatprep.subr.bf16.mxu0 %v1084_v0 }
 0x1ee   :  { %947 = vmatpush3.bf16.msra.mxu0 %v1019_v1 }
 0x1ef   :  { %948 = vmatprep.subr.bf16.mxu0 %v1084_v0 }
 0x1f2   :  { %949 = vmatpush3.bf16.msra.mxu0 %v1020_v2 }
 0x1f3   :  { %974 = vmatprep.subr.bf16.mxu0 %v1084_v0 }
 0x2a8   :  { %v335_v55 = vpop.f32.mrb[4].mxu0 }
 0x2a9   :  { %v336_v56 = vadd.f32 %v776_v54, %v335_v55  ;;  %v912_v57 = vpop.f32.mrb[5].mxu0 }
 0x2aa   :  { %v338_v58 = vpop.f32.mrb[6].mxu0 }
 0x2ab   :  { %v339_v59 = vadd.f32 %v776_v54, %v338_v58  ;;  %v913_v60 = vpop.f32.mrb[7].mxu0  ;;  %v342_v61 = vmax.f32 %v336_v56, 0.0 }
 0x2ad   :  { %v343_v62 = vmax.f32 %v339_v59, 0.0 }
 0x2af   :  { %v344_v63 = vpack.c.bf16 %v343_v62, %v342_v61 }
 0x2b1   :  { %931 = vmatmul.mubr.bf16.vlgmr.msra.gmra.mrb[4].mxu1 %v344_v63 }
 0x2b2   :  { %970 = vmatprep.mubr.msk.bf16.mxu1 %vm1085_vm0, %v1084_v0  ;;  %955 = vmatpush3.bf16.msra.mxu1 %v1021_v3 }
 0x2b3   :  { %956 = vmatprep.subr.bf16.mxu1 %v1084_v0 }
 0x2b6   :  { %957 = vmatpush3.bf16.msra.mxu1 %v1022_v4 }
 0x2b7   :  { %958 = vmatprep.subr.bf16.mxu1 %v1084_v0 }
 0x2ba   :  { %959 = vmatpush3.bf16.msra.mxu1 %v1023_v5 }
 0x2bb   :  { %960 = vmatprep.subr.bf16.mxu1 %v1084_v0 }
 0x2be   :  { %961 = vmatpush3.bf16.msra.mxu1 %v1024_v6 }
 0x2bf   :  { %962 = vmatprep.subr.bf16.mxu1 %v1084_v0 }
 0x2c2   :  { %963 = vmatpush3.bf16.msra.mxu1 %v1025_v7 }
 0x2c3   :  { %964 = vmatprep.subr.bf16.mxu1 %v1084_v0 }
 0x2c6   :  { %965 = vmatpush3.bf16.msra.mxu1 %v1026_v8 }
 0x2c7   :  { %966 = vmatprep.subr.bf16.mxu1 %v1084_v0 }
 0x2ca   :  { %967 = vmatpush3.bf16.msra.mxu1 %v1027_v19 }
 0x2cb   :  { %968 = vmatprep.subr.bf16.mxu1 %v1084_v0 }
 0x2ce   :  { %969 = vmatpush3.bf16.msra.mxu1 %v1028_v20 }
 0x384   :  { %v452_v10 = vpop.f32.mrb[4].mxu1 }
 0x385   :  { %v453_v11 = vadd.f32 %v786_v9, %v452_v10  ;;  %v932_v12 = vpop.f32.mrb[5].mxu1 }
 0x386   :  { %v455_v13 = vpop.f32.mrb[6].mxu1 }
 0x387   :  { %v456_v14 = vadd.f32 %v786_v9, %v455_v13  ;;  %v933_v15 = vpop.f32.mrb[7].mxu1  ;;  %v459_v16 = vmax.f32 %v453_v11, 0.0 }
 0x389   :  { %v460_v17 = vmax.f32 %v456_v14, 0.0 }
 0x38b   :  { %v461_v18 = vpack.c.bf16 %v460_v17, %v459_v16 }
 0x38d   :  { %951 = vmatmul.mubr.bf16.vlgmr.msra.gmra.mrb[8].mxu0 %v461_v18 }
 0x38e   :  { %976 = vmatprep.mubr.msk.bf16.mxu0 %vm1085_vm0, %v1084_v0  ;;  %v806_v0 = vld [vmem:[%s1219_s2 + $0x5] ss:$0 sm:$0xff]  ;;  %s1086_s2 = smov [#allocation5]  }
 0x38f   :  { %s751_s17 = sshll.u32 %s1086_s2, 4  ;;  %s752_s17 = int_to_ptr.vmem [resolvable:$true] %s751_s17 }
 0x390   :  { %s1055_s18 = scalar_lea.vmem %s752_s17, 16  ;;  %s1059_s19 = scalar_lea.vmem %s752_s17, 32 }
 0x391   :  { %p1056_p8 = scmp.ne.s32.totalorder %s752_s17, %s1055_s18  ;;  %p1060_p9 = scmp.lt.s32.totalorder %s752_s17, %s752_s17 }
 0x392   :  { %p1061_p10 = scmp.lt.s32.totalorder %s1059_s19, %s1055_s18 }
 0x394   :  { %p1062_p11 = por %p1061_p10, %p1060_p9 }
 0x396   :  { %p1063_p12 = pnand %p1062_p11, %p1056_p8 }
 0x460   :  { %v569_v22 = vpop.f32.mrb[8].mxu0 }
 0x461   :  { %v570_v23 = vadd.f32 %v796_v21, %v569_v22  ;;  %v952_v24 = vpop.f32.mrb[9].mxu0 }
 0x462   :  { %v572_v25 = vpop.f32.mrb[10].mxu0 }
 0x463   :  { %v573_v26 = vadd.f32 %v796_v21, %v572_v25  ;;  %v953_v27 = vpop.f32.mrb[11].mxu0  ;;  %v576_v28 = vmax.f32 %v570_v23, 0.0 }
 0x465   :  { %v577_v29 = vmax.f32 %v573_v26, 0.0 }
 0x467   :  { %v578_v30 = vpack.c.bf16 %v577_v29, %v576_v28 }
 0x469   :  { %971 = vmatmul.mubr.bf16.vlgmr.msra.gmra.mrb[8].mxu1 %v578_v30 }
 0x53c   :  { %v686_v31 = vpop.f32.mrb[8].mxu1 }
 0x53d   :  { %v687_v32 = vadd.f32 %v806_v0, %v686_v31  ;;  %v972_v33 = vpop.f32.mrb[9].mxu1 }
 0x53e   :  { %v689_v34 = vpop.f32.mrb[10].mxu1 }
 0x53f   :  { %v690_v35 = vadd.f32 %v806_v0, %v689_v34  ;;  %v973_v36 = vpop.f32.mrb[11].mxu1  ;;  %v693_v37 = vmax.f32 %v687_v32, 0.0 }
 0x541   :  { %v694_v38 = vmax.f32 %v690_v35, 0.0 }
 0x543   :  { %v696_v39 = vpack.c.bf16 %v694_v38, %v693_v37 }
 0x545   :  { %975 = vmatpush3.bf16.xpose.msra.mxu0 %v696_v39 }
 0x54c   :  { %977 = vmatmul.mubr.bf16.vlgmr.msra.gmra.mrb[12].mxu0 %v695_v40 }
 0x61f   :  { %v731_v41 = vpop.f32.mrb[12].mxu0 }
 0x620   :  { %v815_v42 = vmul.f32 -1.442695, %v731_v41  ;;  %v978_v43 = vpop.f32.mrb[13].mxu0 }
 0x621   :  { %v734_v44 = vpop.f32.mrb[14].mxu0 }
 0x622   :  { %1029 = vpow2.f32 %v815_v42  ;;  %v979_v45 = vpop.f32.mrb[15].mxu0 }
 0x62c   :  { %v1030_v46 = vpop.eup %1029 }
 0x62d   :  { %v740_v47 = vadd.f32 1.0, %v1030_v46 }
 0x62f   :  { %1031 = vrcp.f32 %v740_v47 }
 0x639   :  { %v1032_v48 = vpop.eup %1031 }
 0x63a   :  { %744 = vst.msk [vmem:[#allocation5] sm:$0x1] %vm743_vm2, %v1032_v48 }
 0x63b   :  { %1066 = shalt.err (!%p1063_p12)
}
 0x63c   :  { %s1067_s21 = scalar_lea.hbm %s1221_s4, 16 }
 0x63d   :  { %p1068_p13 = scmp.ne.s32.totalorder %s1221_s4, %s1067_s21  ;;  %p1071_p0 = scmp.lt.u32.totalorder %s1067_s21, %s1221_s4 }
 0x63f   :  { %p1073_p1 = pnand %p1071_p0, %p1068_p13 }
 0x641   :  { %1076 = shalt.err (!%p1073_p1)
}
 0x642   :  { %754 = dma.vmem_to_hbm [thread:$0]  %s752_s17, 16, %s1221_s4, [#allocation4]  }
 0x643   :  { %1079 = dma.done.wait [#allocation4], 16  }
 0x644   :  { %1080 = vsyncadd [#allocation4], 4294967280 }
 0x645   :  { %758 = vsyncpa [#allocation3], 1 }
 0x646   :  { %759 = vsyncpa [#allocation4], 1 }

</bundles_post_ra>
